<compile_context>
chip_gen: v7x
topology: tpu7x:2x2x1
jax: 0.10.0
libtpu: 0.0.40
codegen_flags: <defaults>
</compile_context>

<pallas_src>
import functools

import jax
import jax.numpy as jnp
from jax import lax
from jax.experimental import pallas as pl
from jax.experimental.pallas import tpu as pltpu


# ----------------------------- Pallas kernel --------------------------------

def _bottleneck_kernel(x_ref, w1_ref, b1_ref, w2_ref, b2_ref, w3_ref, b3_ref,
                       o_ref, *, H, W):
    """Fused Bottleneck forward for one image, channel-first (C, H*W) layout.

    x_ref : (1, Cin, HW)   input image rows (plain reshape of NCHW)
    w1_ref: (C1, Cin)      conv1 weight with bn1 scale folded in
    b1_ref: (C1, 1)        folded bn1 bias
    w2_ref: (C2, 9*C1)     conv2 weights, 9 taps stacked along K, bn2 folded
    b2_ref: (C2, 1)        folded bn2 bias
    w3_ref: (Cout, C2)     conv3 weight with bn3 scale folded in
    b3_ref: (Cout, 1)      folded bn3 bias
    o_ref : (1, Cout, HW)  output image
    """
    HW = H * W
    x = x_ref[0]                                               # (Cin, HW) f32

    # ---- conv1 (1x1) + bn1 (scale folded into w1) + relu -------------------
    y1 = jnp.dot(w1_ref[...], x, preferred_element_type=jnp.float32)
    y1 = jnp.maximum(y1 + b1_ref[...], 0.0)                   # (C1, HW)

    # ---- conv2 (3x3, stride 1, pad 1) on the flattened (C, HW) layout ------
    # Output pixel p = r*W + c of tap (dy, dx) reads y1 at column p + dy*W+dx:
    # a static lane roll (XLU).  Reads that fall outside the image (H or W
    # border) are zeroed by per-lane masks; those masks also cover every lane
    # the roll wraps around, so no zero-padding is needed.
    p = lax.broadcasted_iota(jnp.int32, (1, HW), 1)
    col = p % W
    row_ok = {-1: p >= W, 0: None, 1: p < (H - 1) * W}        # r > 0 / r < H-1
    col_ok = {-1: col > 0, 0: None, 1: col < W - 1}           # c > 0 / c < W-1

    taps = []
    for dy in (-1, 0, 1):
        for dx in (-1, 0, 1):
            shift = dy * W + dx                                # static
            tap = pltpu.roll(y1, (-shift) % HW, axis=1) if shift else y1
            m = row_ok[dy]
            if col_ok[dx] is not None:
                m = col_ok[dx] if m is None else jnp.logical_and(m, col_ok[dx])
            if m is not None:
                tap = jnp.where(m, tap, 0.0)
            taps.append(tap)
    taps = jnp.concatenate(taps, axis=0)                       # (9*C1, HW)

    # Single MXU chain with K = 9*C1 instead of nine K=C1 matmuls.
    y2 = jnp.dot(w2_ref[...], taps, preferred_element_type=jnp.float32)
    y2 = jnp.maximum(y2 + b2_ref[...], 0.0)                    # (C2, HW)

    # ---- conv3 (1x1) + bn3 + residual add + relu ---------------------------
    y3 = jnp.dot(w3_ref[...], y2, preferred_element_type=jnp.float32)
    y3 = y3 + b3_ref[...] + x                                  # identity shortcut
    o_ref[0] = jnp.maximum(y3, 0.0).astype(o_ref.dtype)


# ------------------------------ host wrapper ---------------------------------

def _fold_scale_bias(bn, eps=1e-5):
    gamma, beta, mean, var = bn
    scale = gamma / jnp.sqrt(var + eps)
    bias = beta - mean * scale
    return scale, bias.reshape(-1, 1)                          # (C, 1)


def bottleneck_forward(x_nchw, params):
    """Forward pass matching Bottleneck.forward (defaults, eval-mode BN)."""
    N, Cin, H, W = x_nchw.shape
    HW = H * W
    # Channel-first layout: a pure reshape of NCHW, no transpose.
    x3d = x_nchw.reshape(N, Cin, HW).astype(jnp.float32)

    # conv1: (C1, Cin, 1, 1) -> (C1, Cin), fold bn1 scale into rows.
    s1, b1 = _fold_scale_bias(params["bn1"])
    w1_mat = params["w1"][:, :, 0, 0] * s1[:, None]            # (C1, Cin)
    C1 = w1_mat.shape[0]

    # conv2: (C2, C1, 3, 3) -> (C2, ky, kx, C1) -> (C2, 9*C1), fold bn2 scale.
    # Column order (ky, kx, c1) matches the tap stacking order in the kernel.
    s2, b2 = _fold_scale_bias(params["bn2"])
    C2 = params["w2"].shape[0]
    w2_mat = jnp.transpose(params["w2"], (0, 2, 3, 1)).reshape(C2, 9 * C1)
    w2_mat = w2_mat * s2[:, None]                              # (C2, 9*C1)

    # conv3: (Cout, C2, 1, 1) -> (Cout, C2), fold bn3 scale.
    s3, b3 = _fold_scale_bias(params["bn3"])
    w3_mat = params["w3"][:, :, 0, 0] * s3[:, None]            # (Cout, C2)
    Cout = w3_mat.shape[0]

    # Identity shortcut only: requires inplanes == outplanes, stride == 1.
    assert Cin == Cout, "downsample=None path requires inplanes == outplanes"

    kernel = functools.partial(_bottleneck_kernel, H=H, W=W)

    out3d = pl.pallas_call(
        kernel,
        out_shape=jax.ShapeDtypeStruct((N, Cout, HW), jnp.float32),
        grid=(N,),
        in_specs=[
            pl.BlockSpec((1, Cin, HW), lambda i: (i, 0, 0)),   # x tile
            pl.BlockSpec((C1, Cin), lambda i: (0, 0)),         # w1 (resident)
            pl.BlockSpec((C1, 1), lambda i: (0, 0)),           # b1
            pl.BlockSpec((C2, 9 * C1), lambda i: (0, 0)),      # w2 (stacked taps)
            pl.BlockSpec((C2, 1), lambda i: (0, 0)),           # b2
            pl.BlockSpec((Cout, C2), lambda i: (0, 0)),        # w3
            pl.BlockSpec((Cout, 1), lambda i: (0, 0)),         # b3
        ],
        out_specs=pl.BlockSpec((1, Cout, HW), lambda i: (i, 0, 0)),
        compiler_params=pltpu.CompilerParams(
            dimension_semantics=("parallel",),
        ),
    )(x3d, w1_mat, b1, w2_mat, b2, w3_mat, b3)

    return out3d.reshape(N, Cout, H, W)                        # already NCHW


# --------------------------- pure-JAX reference -------------------------------

def bottleneck_reference(x_nchw, params):
    x = jnp.transpose(x_nchw, (0, 2, 3, 1))                    # NHWC
    dn = ("NHWC", "HWIO", "NHWC")

    def bn(y, bnp):
        g, b, m, v = bnp
        return (y - m) / jnp.sqrt(v + 1e-5) * g + b

    w1 = jnp.transpose(params["w1"], (2, 3, 1, 0))
    w2 = jnp.transpose(params["w2"], (2, 3, 1, 0))
    w3 = jnp.transpose(params["w3"], (2, 3, 1, 0))

    y = lax.conv_general_dilated(x, w1, (1, 1), "VALID", dimension_numbers=dn)
    y = jnp.maximum(bn(y, params["bn1"]), 0.0)
    y = lax.conv_general_dilated(y, w2, (1, 1), [(1, 1), (1, 1)],
                                 dimension_numbers=dn)
    y = jnp.maximum(bn(y, params["bn2"]), 0.0)
    y = lax.conv_general_dilated(y, w3, (1, 1), "VALID", dimension_numbers=dn)
    y = bn(y, params["bn3"]) + x
    y = jnp.maximum(y, 0.0)
    return jnp.transpose(y, (0, 3, 1, 2))


# --------------------------------- main ---------------------------------------

if __name__ == "__main__":
    key = jax.random.PRNGKey(0)
    inplanes, planes = 16, 4
    width = planes            # base_width=64, cardinality=1, reduce_first=1
    outplanes = planes * 4    # expansion = 4
    N, H, W = 2, 16, 16

    ks = jax.random.split(key, 8)
    x = jax.random.normal(ks[0], (N, inplanes, H, W), jnp.float32)

    def bn_params(k, c):
        k1, k2, k3, k4 = jax.random.split(k, 4)
        gamma = 1.0 + 0.1 * jax.random.normal(k1, (c,), jnp.float32)
        beta = 0.1 * jax.random.normal(k2, (c,), jnp.float32)
        mean = 0.1 * jax.random.normal(k3, (c,), jnp.float32)
        var = jnp.abs(1.0 + 0.1 * jax.random.normal(k4, (c,), jnp.float32))
        return (gamma, beta, mean, var)

    params = {
        # PyTorch conv weight layouts: (out_ch, in_ch, kh, kw)
        "w1": 0.2 * jax.random.normal(ks[1], (width, inplanes, 1, 1), jnp.float32),
        "w2": 0.2 * jax.random.normal(ks[2], (width, width, 3, 3), jnp.float32),
        "w3": 0.2 * jax.random.normal(ks[3], (outplanes, width, 1, 1), jnp.float32),
        "bn1": bn_params(ks[4], width),
        "bn2": bn_params(ks[5], width),
        "bn3": bn_params(ks[6], outplanes),
    }

    fwd = jax.jit(bottleneck_forward)
    out = jax.block_until_ready(fwd(x, params))
    ref = jax.block_until_ready(bottleneck_reference(x, params))

    assert out.shape == (N, outplanes, H, W), out.shape
    assert jnp.allclose(out, ref, rtol=1e-4, atol=1e-4), (
        float(jnp.max(jnp.abs(out - ref))))
    print("KERNEL_OK")
</pallas_src>

<mosaic_0001>
module attributes {stable_mosaic.version = 11 : i64} {
  func.func @_bottleneck_kernel(%arg0: i32, %arg1: memref<1x16x256xf32, #tpu.memory_space<vmem>>, %arg2: memref<4x16xf32, #tpu.memory_space<vmem>>, %arg3: memref<4x1xf32, #tpu.memory_space<vmem>>, %arg4: memref<4x36xf32, #tpu.memory_space<vmem>>, %arg5: memref<4x1xf32, #tpu.memory_space<vmem>>, %arg6: memref<16x4xf32, #tpu.memory_space<vmem>>, %arg7: memref<16x1xf32, #tpu.memory_space<vmem>>, %arg8: memref<1x16x256xf32, #tpu.memory_space<vmem>>) attributes {dimension_semantics = [#tpu.dimension_semantics<parallel>], iteration_bounds = array<i64: 2>, scalar_prefetch = 0 : i64, scratch_operands = 0 : i64, tpu.core_type = #tpu.core_type<tc>, window_params = [{transform_indices = @transform_0, window_bounds = array<i64: 1, 16, 256>}, {pipeline_mode = #tpu.pipeline_mode<synchronous>, transform_indices = @transform_1, window_bounds = array<i64: 4, 16>}, {pipeline_mode = #tpu.pipeline_mode<synchronous>, transform_indices = @transform_2, window_bounds = array<i64: 4, 1>}, {pipeline_mode = #tpu.pipeline_mode<synchronous>, transform_indices = @transform_3, window_bounds = array<i64: 4, 36>}, {pipeline_mode = #tpu.pipeline_mode<synchronous>, transform_indices = @transform_4, window_bounds = array<i64: 4, 1>}, {pipeline_mode = #tpu.pipeline_mode<synchronous>, transform_indices = @transform_5, window_bounds = array<i64: 16, 4>}, {pipeline_mode = #tpu.pipeline_mode<synchronous>, transform_indices = @transform_6, window_bounds = array<i64: 16, 1>}, {transform_indices = @transform_7, window_bounds = array<i64: 1, 16, 256>}]} {
    %c0 = arith.constant 0 : index
    %c0_0 = arith.constant 0 : index
    %c0_1 = arith.constant 0 : index
    %0 = vector.load %arg1[%c0, %c0_0, %c0_1] : memref<1x16x256xf32, #tpu.memory_space<vmem>>, vector<1x16x256xf32>
    %1 = vector.shape_cast %0 : vector<1x16x256xf32> to vector<16x256xf32>
    %c0_2 = arith.constant 0 : index
    %c0_3 = arith.constant 0 : index
    %2 = vector.load %arg2[%c0_2, %c0_3] : memref<4x16xf32, #tpu.memory_space<vmem>>, vector<4x16xf32>
    %cst = arith.constant dense<0.000000e+00> : vector<4x256xf32>
    %3 = tpu.matmul %2, %1, %cst {dimension_numbers = #tpu.dot_dimension_numbers<[1], [0], [0], [1], [0, 0, 1, 1], [], []>} : vector<4x16xf32>, vector<16x256xf32>, vector<4x256xf32> -> vector<4x256xf32>
    %c0_4 = arith.constant 0 : index
    %c0_5 = arith.constant 0 : index
    %4 = vector.load %arg3[%c0_4, %c0_5] : memref<4x1xf32, #tpu.memory_space<vmem>>, vector<4x1xf32>
    %5 = vector.broadcast %4 : vector<4x1xf32> to vector<4x256xf32>
    %6 = arith.addf %3, %5 : vector<4x256xf32>
    %cst_6 = arith.constant 0.000000e+00 : f32
    %7 = vector.broadcast %cst_6 : f32 to vector<4x256xf32>
    %8 = arith.maximumf %6, %7 : vector<4x256xf32>
    %9 = tpu.iota {dimensions = array<i32: 1>} : vector<1x256xi32>
    %c16_i32 = arith.constant 16 : i32
    %c0_i32 = arith.constant 0 : i32
    %10 = arith.cmpi eq, %c16_i32, %c0_i32 : i32
    %c1_i32 = arith.constant 1 : i32
    %11 = arith.select %10, %c1_i32, %c16_i32 : i32
    %12 = vector.broadcast %11 : i32 to vector<1x256xi32>
    %13 = arith.remsi %9, %12 : vector<1x256xi32>
    %c0_i32_7 = arith.constant 0 : i32
    %14 = vector.broadcast %c0_i32_7 : i32 to vector<1x256xi32>
    %15 = arith.cmpi ne, %13, %14 : vector<1x256xi32>
    %c0_i32_8 = arith.constant 0 : i32
    %16 = vector.broadcast %c0_i32_8 : i32 to vector<1x256xi32>
    %17 = arith.cmpi slt, %13, %16 : vector<1x256xi32>
    %c0_i32_9 = arith.constant 0 : i32
    %18 = arith.cmpi slt, %11, %c0_i32_9 : i32
    %19 = vector.broadcast %18 : i1 to vector<1x256xi1>
    %20 = vector.broadcast %19 : vector<1x256xi1> to vector<1x256xi1>
    %21 = arith.xori %17, %20 : vector<1x256xi1>
    %22 = arith.andi %21, %15 : vector<1x256xi1>
    %23 = vector.broadcast %11 : i32 to vector<1x256xi32>
    %24 = arith.addi %13, %23 : vector<1x256xi32>
    %25 = arith.select %22, %24, %13 : vector<1x256xi1>, vector<1x256xi32>
    %c16_i32_10 = arith.constant 16 : i32
    %26 = vector.broadcast %c16_i32_10 : i32 to vector<1x256xi32>
    %27 = arith.cmpi sge, %9, %26 : vector<1x256xi32>
    %c240_i32 = arith.constant 240 : i32
    %28 = vector.broadcast %c240_i32 : i32 to vector<1x256xi32>
    %29 = arith.cmpi slt, %9, %28 : vector<1x256xi32>
    %c0_i32_11 = arith.constant 0 : i32
    %30 = vector.broadcast %c0_i32_11 : i32 to vector<1x256xi32>
    %31 = arith.cmpi sgt, %25, %30 : vector<1x256xi32>
    %c15_i32 = arith.constant 15 : i32
    %32 = vector.broadcast %c15_i32 : i32 to vector<1x256xi32>
    %33 = arith.cmpi slt, %25, %32 : vector<1x256xi32>
    %c17_i32 = arith.constant 17 : i32
    %34 = tpu.dynamic_rotate %8 by %c17_i32 dim 1 : vector<4x256xf32>, i32 -> vector<4x256xf32>
    %35 = arith.andi %27, %31 : vector<1x256xi1>
    %cst_12 = arith.constant 0.000000e+00 : f32
    %36 = vector.shape_cast %35 : vector<1x256xi1> to vector<1x256xi1>
    %37 = vector.broadcast %36 : vector<1x256xi1> to vector<4x256xi1>
    %38 = vector.broadcast %cst_12 : f32 to vector<4x256xf32>
    %39 = arith.select %37, %34, %38 : vector<4x256xi1>, vector<4x256xf32>
    %c16_i32_13 = arith.constant 16 : i32
    %40 = tpu.dynamic_rotate %8 by %c16_i32_13 dim 1 : vector<4x256xf32>, i32 -> vector<4x256xf32>
    %cst_14 = arith.constant 0.000000e+00 : f32
    %41 = vector.shape_cast %27 : vector<1x256xi1> to vector<1x256xi1>
    %42 = vector.broadcast %41 : vector<1x256xi1> to vector<4x256xi1>
    %43 = vector.broadcast %cst_14 : f32 to vector<4x256xf32>
    %44 = arith.select %42, %40, %43 : vector<4x256xi1>, vector<4x256xf32>
    %c15_i32_15 = arith.constant 15 : i32
    %45 = tpu.dynamic_rotate %8 by %c15_i32_15 dim 1 : vector<4x256xf32>, i32 -> vector<4x256xf32>
    %46 = arith.andi %27, %33 : vector<1x256xi1>
    %cst_16 = arith.constant 0.000000e+00 : f32
    %47 = vector.shape_cast %46 : vector<1x256xi1> to vector<1x256xi1>
    %48 = vector.broadcast %47 : vector<1x256xi1> to vector<4x256xi1>
    %49 = vector.broadcast %cst_16 : f32 to vector<4x256xf32>
    %50 = arith.select %48, %45, %49 : vector<4x256xi1>, vector<4x256xf32>
    %c1_i32_17 = arith.constant 1 : i32
    %51 = tpu.dynamic_rotate %8 by %c1_i32_17 dim 1 : vector<4x256xf32>, i32 -> vector<4x256xf32>
    %cst_18 = arith.constant 0.000000e+00 : f32
    %52 = vector.shape_cast %31 : vector<1x256xi1> to vector<1x256xi1>
    %53 = vector.broadcast %52 : vector<1x256xi1> to vector<4x256xi1>
    %54 = vector.broadcast %cst_18 : f32 to vector<4x256xf32>
    %55 = arith.select %53, %51, %54 : vector<4x256xi1>, vector<4x256xf32>
    %c255_i32 = arith.constant 255 : i32
    %56 = tpu.dynamic_rotate %8 by %c255_i32 dim 1 : vector<4x256xf32>, i32 -> vector<4x256xf32>
    %cst_19 = arith.constant 0.000000e+00 : f32
    %57 = vector.shape_cast %33 : vector<1x256xi1> to vector<1x256xi1>
    %58 = vector.broadcast %57 : vector<1x256xi1> to vector<4x256xi1>
    %59 = vector.broadcast %cst_19 : f32 to vector<4x256xf32>
    %60 = arith.select %58, %56, %59 : vector<4x256xi1>, vector<4x256xf32>
    %c241_i32 = arith.constant 241 : i32
    %61 = tpu.dynamic_rotate %8 by %c241_i32 dim 1 : vector<4x256xf32>, i32 -> vector<4x256xf32>
    %62 = arith.andi %29, %31 : vector<1x256xi1>
    %cst_20 = arith.constant 0.000000e+00 : f32
    %63 = vector.shape_cast %62 : vector<1x256xi1> to vector<1x256xi1>
    %64 = vector.broadcast %63 : vector<1x256xi1> to vector<4x256xi1>
    %65 = vector.broadcast %cst_20 : f32 to vector<4x256xf32>
    %66 = arith.select %64, %61, %65 : vector<4x256xi1>, vector<4x256xf32>
    %c240_i32_21 = arith.constant 240 : i32
    %67 = tpu.dynamic_rotate %8 by %c240_i32_21 dim 1 : vector<4x256xf32>, i32 -> vector<4x256xf32>
    %cst_22 = arith.constant 0.000000e+00 : f32
    %68 = vector.shape_cast %29 : vector<1x256xi1> to vector<1x256xi1>
    %69 = vector.broadcast %68 : vector<1x256xi1> to vector<4x256xi1>
    %70 = vector.broadcast %cst_22 : f32 to vector<4x256xf32>
    %71 = arith.select %69, %67, %70 : vector<4x256xi1>, vector<4x256xf32>
    %c239_i32 = arith.constant 239 : i32
    %72 = tpu.dynamic_rotate %8 by %c239_i32 dim 1 : vector<4x256xf32>, i32 -> vector<4x256xf32>
    %73 = arith.andi %29, %33 : vector<1x256xi1>
    %cst_23 = arith.constant 0.000000e+00 : f32
    %74 = vector.shape_cast %73 : vector<1x256xi1> to vector<1x256xi1>
    %75 = vector.broadcast %74 : vector<1x256xi1> to vector<4x256xi1>
    %76 = vector.broadcast %cst_23 : f32 to vector<4x256xf32>
    %77 = arith.select %75, %72, %76 : vector<4x256xi1>, vector<4x256xf32>
    %78 = tpu.concatenate %39, %44, %50, %55, %8, %60, %66, %71, %77 in 0 : vector<4x256xf32>, vector<4x256xf32>, vector<4x256xf32>, vector<4x256xf32>, vector<4x256xf32>, vector<4x256xf32>, vector<4x256xf32>, vector<4x256xf32>, vector<4x256xf32> -> vector<36x256xf32>
    %c0_24 = arith.constant 0 : index
    %c0_25 = arith.constant 0 : index
    %79 = vector.load %arg4[%c0_24, %c0_25] : memref<4x36xf32, #tpu.memory_space<vmem>>, vector<4x36xf32>
    %cst_26 = arith.constant dense<0.000000e+00> : vector<4x256xf32>
    %80 = tpu.matmul %79, %78, %cst_26 {dimension_numbers = #tpu.dot_dimension_numbers<[1], [0], [0], [1], [0, 0, 1, 1], [], []>} : vector<4x36xf32>, vector<36x256xf32>, vector<4x256xf32> -> vector<4x256xf32>
    %c0_27 = arith.constant 0 : index
    %c0_28 = arith.constant 0 : index
    %81 = vector.load %arg5[%c0_27, %c0_28] : memref<4x1xf32, #tpu.memory_space<vmem>>, vector<4x1xf32>
    %82 = vector.broadcast %81 : vector<4x1xf32> to vector<4x256xf32>
    %83 = arith.addf %80, %82 : vector<4x256xf32>
    %cst_29 = arith.constant 0.000000e+00 : f32
    %84 = vector.broadcast %cst_29 : f32 to vector<4x256xf32>
    %85 = arith.maximumf %83, %84 : vector<4x256xf32>
    %c0_30 = arith.constant 0 : index
    %c0_31 = arith.constant 0 : index
    %86 = vector.load %arg6[%c0_30, %c0_31] : memref<16x4xf32, #tpu.memory_space<vmem>>, vector<16x4xf32>
    %cst_32 = arith.constant dense<0.000000e+00> : vector<16x256xf32>
    %87 = tpu.matmul %86, %85, %cst_32 {dimension_numbers = #tpu.dot_dimension_numbers<[1], [0], [0], [1], [0, 0, 1, 1], [], []>} : vector<16x4xf32>, vector<4x256xf32>, vector<16x256xf32> -> vector<16x256xf32>
    %c0_33 = arith.constant 0 : index
    %c0_34 = arith.constant 0 : index
    %88 = vector.load %arg7[%c0_33, %c0_34] : memref<16x1xf32, #tpu.memory_space<vmem>>, vector<16x1xf32>
    %89 = vector.broadcast %88 : vector<16x1xf32> to vector<16x256xf32>
    %90 = arith.addf %87, %89 : vector<16x256xf32>
    %91 = arith.addf %90, %1 : vector<16x256xf32>
    %cst_35 = arith.constant 0.000000e+00 : f32
    %92 = vector.broadcast %cst_35 : f32 to vector<16x256xf32>
    %93 = arith.maximumf %91, %92 : vector<16x256xf32>
    %c0_36 = arith.constant 0 : index
    %c0_37 = arith.constant 0 : index
    %c0_38 = arith.constant 0 : index
    %94 = vector.load %arg8[%c0_36, %c0_37, %c0_38] : memref<1x16x256xf32, #tpu.memory_space<vmem>>, vector<1x16x256xf32>
    %95 = vector.shape_cast %94 : vector<1x16x256xf32> to vector<16x256xf32>
    %96 = vector.shape_cast %93 : vector<16x256xf32> to vector<1x16x256xf32>
    tpu.vector_store %arg8[%c0_36, %c0_37, %c0_38], %96 {strides = array<i32>} : memref<1x16x256xf32, #tpu.memory_space<vmem>>, vector<1x16x256xf32>,
    return
  }
  func.func @transform_0(%arg0: i32) -> (i32, i32, i32) {
    %c0_i32 = arith.constant 0 : i32
    %c0_i32_0 = arith.constant 0 : i32
    %c0_i32_1 = arith.constant 0 : i32
    return %arg0, %c0_i32, %c0_i32_0 : i32, i32, i32
  }
  func.func @transform_1(%arg0: i32) -> (i32, i32) {
    %c0_i32 = arith.constant 0 : i32
    %c0_i32_0 = arith.constant 0 : i32
    %c0_i32_1 = arith.constant 0 : i32
    return %c0_i32, %c0_i32_0 : i32, i32
  }
  func.func @transform_2(%arg0: i32) -> (i32, i32) {
    %c0_i32 = arith.constant 0 : i32
    %c0_i32_0 = arith.constant 0 : i32
    %c0_i32_1 = arith.constant 0 : i32
    return %c0_i32, %c0_i32_0 : i32, i32
  }
  func.func @transform_3(%arg0: i32) -> (i32, i32) {
    %c0_i32 = arith.constant 0 : i32
    %c0_i32_0 = arith.constant 0 : i32
    %c0_i32_1 = arith.constant 0 : i32
    return %c0_i32, %c0_i32_0 : i32, i32
  }
  func.func @transform_4(%arg0: i32) -> (i32, i32) {
    %c0_i32 = arith.constant 0 : i32
    %c0_i32_0 = arith.constant 0 : i32
    %c0_i32_1 = arith.constant 0 : i32
    return %c0_i32, %c0_i32_0 : i32, i32
  }
  func.func @transform_5(%arg0: i32) -> (i32, i32) {
    %c0_i32 = arith.constant 0 : i32
    %c0_i32_0 = arith.constant 0 : i32
    %c0_i32_1 = arith.constant 0 : i32
    return %c0_i32, %c0_i32_0 : i32, i32
  }
  func.func @transform_6(%arg0: i32) -> (i32, i32) {
    %c0_i32 = arith.constant 0 : i32
    %c0_i32_0 = arith.constant 0 : i32
    %c0_i32_1 = arith.constant 0 : i32
    return %c0_i32, %c0_i32_0 : i32, i32
  }
  func.func @transform_7(%arg0: i32) -> (i32, i32, i32) {
    %c0_i32 = arith.constant 0 : i32
    %c0_i32_0 = arith.constant 0 : i32
    %c0_i32_1 = arith.constant 0 : i32
    return %arg0, %c0_i32, %c0_i32_0 : i32, i32, i32
  }
}

</mosaic_0001>

<bundles_post_ra>
// kernel: bottleneck_forward.1
= control target key start
LH: loop header
LB: loop body
LE: loop exit
PB: predicated region body
PF: predicated region fallthrough
CT: control target
= control target key end

     0   :  { %s954_s24 = smov 0   ;;  %s1163_s0 = inlined_call_operand.vmem [shape: f32[2,16,256], index: 0, kind: input, shape index: {}]   ;;  %s1164_s1 = inlined_call_operand.vmem [shape: f32[4,16], index: 1, kind: input, shape index: {}]   ;;  %s1165_s2 = inlined_call_operand.vmem [shape: f32[4,1], index: 2, kind: input, shape index: {}]   ;;  %s1166_s3 = inlined_call_operand.vmem [shape: f32[4,36], index: 3, kind: input, shape index: {}]   ;;  %s1167_s4 = inlined_call_operand.vmem [shape: f32[4,1], index: 4, kind: input, shape index: {}]   ;;  %s1168_s5 = inlined_call_operand.vmem [shape: f32[16,4], index: 5, kind: input, shape index: {}]   ;;  %s1169_s6 = inlined_call_operand.vmem [shape: f32[16,1], index: 6, kind: input, shape index: {}]   ;;  %s1170_s7 = inlined_call_operand.vmem [shape: f32[2,16,256], index: 7, kind: output, shape index: {}]  }
   0x1 LB: > { %s808_s25 = sadd.s32 4294967295, %s902_s24   ;;  %p812_p0 = scmp.ge.s32.totalorder %s902_s24, 1  ;;  %s902_s24 = sphi %s954_s24, %s17_s24  }
   0x2   : > { %p237_p1 = scmp.lt.s32.totalorder %s902_s24, 3 }
   0x4   : > { %p238_p2 = pnand %p812_p0, %p237_p1 }
   0x5   : > { %p269_p3 = scmp.lt.s32.totalorder (!%p238_p2), %s808_s25, 1  ;;  %v904_v0 = vmov (!%p238_p2), 0.0   ;;  %v905_v1 = vmov (!%p238_p2), 0   ;;  %v284_v2 = vld [vmem:[%s1165_s2] sm:$0xf] (!%p238_p2)  ;;  %vm290_vm0 = vcmask (!%p238_p2), 130048   ;;  %v367_v20 = vlaneseq (!%p238_p2) }
   0x6   : > { %241 = sbr.rel (%p238_p2) target bundleno = 825 (0x339), region = 48  ;;  %358 = vmatprep.mubr.f32.mxu0 (!%p238_p2), %v904_v0  ;;  %859 = vset.pattern.permute.xlu0 (!%p238_p2), %v905_v1  ;;  %v283_v9 = vld [vmem:[%s1164_s1] sm:$0xf] (!%p238_p2)  ;;  %s906_s11 = smov (!%p238_p2), 16   ;;  %v640_v19 = vld [vmem:[%s1169_s6 + $0x8] sm:$0xff] (!%p238_p2)  ;;  %vm538_vm12 = vcmask (!%p238_p2), 1043456  }
   0x7   : > { %287 = vperm.xlu0 (!%p238_p2), %859, %v284_v2   ;;  %628 = vmatprep.mubr.f32.mxu1 (!%p238_p2), %v904_v0  ;;  %s907_s12 = smov (!%p238_p2), 1   ;;  %s908_s13 = smov (!%p238_p2), 17   ;;  %v548_v18 = vld [vmem:[%s1167_s4] sm:$0xf] (!%p238_p2)  ;;  %v1005_v21 = vand.u32 (!%p238_p2), 127, %v367_v20 }
   0x8   : > { %895 = vset.pattern.permute.xlu1 (!%p238_p2), %v905_v1  ;;  %s909_s14 = smov (!%p238_p2), 15   ;;  %s910_s15 = smov (!%p238_p2), 127   ;;  %v637_v25 = vld [vmem:[%s1168_s5] sm:$0xff] (!%p238_p2) }
   0x9   : > { %s911_s16 = smov (!%p238_p2), 112   ;;  %s912_s17 = smov (!%p238_p2), 113   ;;  %v1008_v22 = vadd.s32 (!%p238_p2), 128, %v1005_v21  ;;  %v374_v24 = vand.u32 (!%p238_p2), 15, %v1005_v21  ;;  %vm421_vm1 = vcmp.lt.s32.totalorder (!%p238_p2), %v1005_v21, 16  ;;  %vm449_vm2 = vcmp.lt.s32.totalorder (!%p238_p2), %v1005_v21, 1 }
   0xa   : > { %s913_s18 = smov (!%p238_p2), 111   ;;  %vm462_vm5 = vcmp.lt.s32.totalorder (!%p238_p2), %v1005_v21, 127  ;;  %vm406_vm6 = vcmp.lt.s32.totalorder (!%p238_p2), %v1005_v21, 17  ;;  %vm394_vm7 = vcmp.ge.s32.totalorder (!%p238_p2), %v1005_v21, 16  ;;  %vm490_vm9 = vcmp.lt.s32.totalorder (!%p238_p2), %v1005_v21, 112 }
   0xb   : > { %v381_v23 = vand.u32 (!%p238_p2), 15, %v1008_v22  ;;  %vm1014_vm3 = vcmp.lt.s32.totalorder (!%p238_p2), %v374_v24, 15  ;;  %vm1025_vm8 = vcmp.gt.s32.totalorder (!%p238_p2), %v374_v24, 0  ;;  %vm434_vm11 = vcmp.lt.s32.totalorder (!%p238_p2), %v1005_v21, 15 }
   0xc   : > { %vm475_vm13 = vcmp.lt.s32.totalorder (!%p238_p2), %v1005_v21, 113  ;;  %vm1050_vm14 = vmand (!%p238_p2), %vm394_vm7, %vm1025_vm8 }
   0xd   : > { %s1186_s25 = smov (!%p269_p3, %s808_s25), 1  ;;  %vm1018_vm4 = vcmp.gt.s32.totalorder %v381_v23, 0  ;;  %vm1030_vm10 = vcmp.lt.s32.totalorder %v381_v23, 15  ;;  %vm1062_vm15 = vmand %vm394_vm7, %vm1014_vm3 }
   0xe   : > { %s827_s28 = sshll.u32 %s1186_s25, 5 }
   0xf   : > { %s273_s8 = scalar_lea.vmem %s1163_s0, %s827_s28 }
  0x10   : > { %v975_v3 = vld [vmem:[%s273_s8 + $0x8] sm:$0xff]  ;;  %v977_v4 = vld [vmem:[%s273_s8 + $0x18] sm:$0xff]  ;;  %v979_v5 = vld [vmem:[%s273_s8] sm:$0xff] }
  0x11   : > { %v829_v6 = vpack.c.bf16 %v977_v4, %v975_v3  ;;  %v983_v7 = vld [vmem:[%s273_s8 + $0x10] sm:$0xff] }
  0x12   : > { %v831_v8 = vpack.c.bf16 %v983_v7, %v979_v5 }
  0x13   : > { %830 = vmatprep.subr.bf16.mxu0 %v829_v6 }
  0x14   : > { %832 = vmatpush1.bf16.msra.mxu0 %v831_v8 }
  0x17   : > { %817 = vmatmul.mubr.msk.f32.vlgmr.msra.gmra.mrb[0].mxu0 %vm290_vm0, %v283_v9  ;;  %vm397_vm0 = vcmp.lt.s32.totalorder %v1008_v22, 240 }
  0x18   : > { %728 = vmatprep.mubr.f32.mxu0 %v904_v0 }
  0x86   : > { %v288_v10 = vpop.permute.xlu0 %287 }
  0xea   : > { %v360_v11 = vpop.f32.mrb[0].mxu0 }
  0xeb   : > { %v361_v12 = vadd.f32 %v360_v11, %v288_v10  ;;  %v362_v13 = vpop.f32.mrb[1].mxu0 }
  0xec   : > { %v363_v14 = vadd.f32 %v362_v13, %v288_v10 }
  0xed   : > { %v991_v15 = vmax.f32 %v361_v12, 0.0 }
  0xee   : > { %v993_v16 = vmax.f32 %v363_v14, 0.0 }
  0xf0   : > { %v865_v17 = vpack.i.bf16 %v993_v16, %v991_v15 }
  0xf2   : > { %866 = vrot.lane.b32.xlu1 %v865_v17, %s906_s11  ;;  %861 = vrot.lane.b32.xlu0 %v865_v17, %s907_s12 }
  0xf6   : > { %871 = vrot.lane.b32.xlu1 %v865_v17, %s908_s13  ;;  %876 = vrot.lane.b32.xlu0 %v865_v17, %s909_s14  ;;  %s278_s13 = scalar_lea.vmem %s1170_s7, %s827_s28 }
  0xfa   : > { %881 = vrot.lane.b32.xlu1 %v865_v17, %s910_s15  ;;  %886 = vrot.lane.b32.xlu0 %v865_v17, %s911_s16 }
  0xfe   : > { %891 = vrot.lane.b32.xlu1 %v865_v17, %s912_s17  ;;  %499 = vrot.lane.b32.xlu0 %v991_v15, %s913_s18 }
 0x102   : > { %501 = vrot.lane.b32.xlu1 %v993_v16, %s913_s18  ;;  %551 = vperm.xlu0 %859, %v548_v18  }
 0x106   : > { %648 = vperm.xlu0 %859, %v640_v19  }
 0x164   : > { %v867_v27 = vpop.permute.xlu1 %866  ;;  %v862_v28 = vpop.permute.xlu0 %861 }
 0x165   : > { %v869_v30 = vunpack.i.h.bf16 %v867_v27  ;;  %v868_v31 = vunpack.i.l.bf16 %v867_v27  ;;  %v864_v32 = vunpack.i.h.bf16 %v862_v28  ;;  %v863_v33 = vunpack.i.l.bf16 %v862_v28 }
 0x167   : > { %v423_v35 = vsel %vm421_vm1, %v869_v30, %v868_v31  ;;  %v450_v36 = vsel %vm449_vm2, %v863_v33, %v864_v32  ;;  %v451_v37 = vsel %vm449_vm2, %v864_v32, %v863_v33  ;;  %v422_v38 = vsel %vm421_vm1, %v868_v31, %v869_v30  ;;  %vm1103_vm1 = vmand %vm397_vm0, %vm1018_vm4 }
 0x168   : > { %v872_v39 = vpop.permute.xlu1 %871  ;;  %v877_v40 = vpop.permute.xlu0 %876  ;;  %v457_v41 = vsel %vm1018_vm4, %v450_v36, 0.0  ;;  %v428_v43 = vsel %vm394_vm7, %v423_v35, 0.0  ;;  %v456_v44 = vsel %vm1025_vm8, %v451_v37, 0.0  ;;  %v517_v50 = vrot.slane %v422_v38, 4 }
 0x169   : > { %v874_v45 = vunpack.i.h.bf16 %v872_v39  ;;  %v873_v46 = vunpack.i.l.bf16 %v872_v39  ;;  %v879_v47 = vunpack.i.h.bf16 %v877_v40  ;;  %v878_v48 = vunpack.i.l.bf16 %v877_v40 }
 0x16a   : > { %v523_v51 = vrot.slane %v457_v41, 4  ;;  %v516_v52 = vrot.slane %v428_v43, 4  ;;  %v522_v53 = vrot.slane %v456_v44, 4  ;;  %vm503_vm2 = vcmp.lt.s32.totalorder %v1005_v21, 111  ;;  %v639_v21 = vld [vmem:[%s1169_s6] sm:$0xff] }
 0x16b   : > { %v407_v54 = vsel %vm406_vm6, %v873_v46, %v874_v45  ;;  %v435_v55 = vsel %vm434_vm11, %v878_v48, %v879_v47  ;;  %v408_v56 = vsel %vm406_vm6, %v874_v45, %v873_v46  ;;  %v436_v57 = vsel %vm434_vm11, %v879_v47, %v878_v48  ;;  %643 = vperm.xlu1 %895, %v639_v21  }
 0x16c   : > { %v882_v58 = vpop.permute.xlu1 %881  ;;  %v887_v59 = vpop.permute.xlu0 %886  ;;  %v416_v60 = vsel %vm1018_vm4, %v407_v54, 0.0  ;;  %v444_v61 = vsel %vm1030_vm10, %v435_v55, 0.0  ;;  %v415_v62 = vsel %vm1050_vm14, %v408_v56, 0.0  ;;  %v443_v63 = vsel %vm1062_vm15, %v436_v57, 0.0  ;;  %vm507_vm4 = vmand %vm397_vm0, %vm1030_vm10  ;;  %v638_v56 = vld [vmem:[%s1168_s5 + $0x8] sm:$0xff] }
 0x16d   : > { %v884_v1 = vunpack.i.h.bf16 %v882_v58  ;;  %v883_v2 = vunpack.i.l.bf16 %v882_v58  ;;  %v889_v6 = vunpack.i.h.bf16 %v887_v59  ;;  %v888_v8 = vunpack.i.l.bf16 %v887_v59 }
 0x16e   : > { %v540_v9 = vsel %vm538_vm12, %v416_v60, %v517_v50  ;;  %v542_v10 = vsel %vm538_vm12, %v444_v61, %v523_v51  ;;  %v539_v11 = vsel %vm538_vm12, %v415_v62, %v516_v52  ;;  %v541_v17 = vsel %vm538_vm12, %v443_v63, %v522_v53 }
 0x16f   : > { %v463_v12 = vsel %vm462_vm5, %v883_v2, %v884_v1  ;;  %v464_v13 = vsel %vm462_vm5, %v884_v1, %v883_v2  ;;  %v492_v14 = vsel %vm490_vm9, %v889_v6, %v888_v8  ;;  %v491_v19 = vsel %vm490_vm9, %v888_v8, %v889_v6 }
 0x170   : > { %v469_v18 = vsel %vm1014_vm3, %v463_v12, 0.0  ;;  %v892_v20 = vpop.permute.xlu1 %891  ;;  %v470_v23 = vsel %vm1030_vm10, %v464_v13, 0.0  ;;  %v833_v24 = vpack.c.bf16 %v542_v10, %v540_v9  ;;  %v835_v33 = vpack.c.bf16 %v541_v17, %v539_v11  ;;  %v500_v42 = vpop.permute.xlu0 %499 }
 0x171   : > { %v528_v27 = vrot.slane %v469_v18, 4  ;;  %v894_v28 = vunpack.i.h.bf16 %v892_v20  ;;  %v893_v30 = vunpack.i.l.bf16 %v892_v20  ;;  %v529_v31 = vrot.slane %v470_v23, 4 }
 0x172   : > { %834 = vmatprep.subr.bf16.mxu1 %v833_v24  ;;  %v498_v35 = vsel %vm397_vm0, %v492_v14, 0.0  ;;  %v534_v36 = vrot.slane %v491_v19, 4  ;;  %vm554_vm5 = vcmask 293888  }
 0x173   : > { %v476_v37 = vsel %vm475_vm13, %v893_v30, %v894_v28  ;;  %v477_v26 = vsel %vm475_vm13, %v894_v28, %v893_v30  ;;  %v535_v38 = vrot.slane %v498_v35, 4  ;;  %836 = vmatpush1.bf16.msra.mxu1 %v835_v33  ;;  %v544_v43 = vsel %vm538_vm12, %v993_v16, %v529_v31 }
 0x174   : > { %v502_v39 = vpop.permute.xlu1 %501  ;;  %v485_v40 = vsel %vm1103_vm1, %v477_v26, 0.0  ;;  %v484_v41 = vsel %vm1025_vm8, %v476_v37, 0.0  ;;  %v543_v45 = vsel %vm538_vm12, %v991_v15, %v528_v27  ;;  %v547_v15 = vld [vmem:[%s1166_s3] sm:$0xf] }
 0x175   : > { %v546_v44 = vsel %vm538_vm12, %v485_v40, %v535_v38  ;;  %v545_v46 = vsel %vm538_vm12, %v484_v41, %v534_v36  ;;  %v505_v29 = vsel %vm503_vm2, %v502_v39, %v500_v42  ;;  %v504_v16 = vsel %vm503_vm2, %v500_v42, %v502_v39 }
 0x176   : > { %v837_v47 = vpack.c.bf16 %v546_v44, %v544_v43  ;;  %v839_v48 = vpack.c.bf16 %v545_v46, %v543_v45  ;;  %v513_v49 = vsel %vm507_vm4, %v505_v29, 0.0  ;;  %v512_v22 = vsel %vm1014_vm3, %v504_v16, 0.0 }
 0x177   : > { %vm651_vm3 = vcmask 31744  }
 0x178   : > { %838 = vmatprep.subr.bf16.mxu1 %v837_v47 }
 0x179   : > { %840 = vmatpush1.bf16.msra.mxu1 %v839_v48 }
 0x17a   : > { %818 = vmatprep.subr.msk.mxu1 %vm538_vm12, %v513_v49 }
 0x17d   : > { %819 = vmatpush1.msk.msra.mxu1 %vm538_vm12, %v512_v22 }
 0x17e   : > { %820 = vmatmul.mubr.msk.f32.vlgmr.msra.gmra.mrb[0].mxu1 %vm554_vm5, %v547_v15 }
 0x181   : > { %v552_v34 = vpop.permute.xlu0 %551 }
 0x185   : > { %v649_v63 = vpop.permute.xlu0 %648 }
 0x1ea   : > { %v644_v57 = vpop.permute.xlu1 %643 }
 0x251   : > { %v630_v50 = vpop.f32.mrb[0].mxu1 }
 0x252   : > { %v631_v51 = vadd.f32 %v630_v50, %v552_v34  ;;  %v632_v52 = vpop.f32.mrb[1].mxu1 }
 0x253   : > { %v633_v53 = vadd.f32 %v632_v52, %v552_v34 }
 0x254   : > { %v635_v55 = vmax.f32 %v631_v51, 0.0 }
 0x255   : > { %v636_v54 = vmax.f32 %v633_v53, 0.0 }
 0x257   : > { %821 = vmatprep.subr.msk.mxu0 %vm538_vm12, %v636_v54 }
 0x258   : > { %822 = vmatpush1.msk.msra.mxu0 %vm538_vm12, %v635_v55 }
 0x259   : > { %823 = vmatmul.mubr.msk.f32.vlgmr.msra.gmra.mrb[2].mxu0 %vm651_vm3, %v637_v25 }
 0x25a   : > { %734 = vmatprep.mubr.f32.mxu0 %v904_v0 }
 0x25d   : > { %824 = vmatmul.mubr.msk.f32.gmra.mrb[4].mxu0 %vm651_vm3, %v638_v56 }
 0x32c   : > { %v730_v58 = vpop.f32.mrb[2].mxu0 }
 0x32d   : > { %v731_v59 = vadd.f32 %v730_v58, %v644_v57  ;;  %v732_v60 = vpop.f32.mrb[3].mxu0 }
 0x32e   : > { %v733_v61 = vadd.f32 %v732_v60, %v644_v57 }
 0x32f   : > { %v741_v62 = vadd.f32 %v731_v59, %v979_v5 }
 0x330   : > { %v742_v0 = vadd.f32 %v733_v61, %v975_v3  ;;  %v736_v1 = vpop.f32.mrb[4].mxu0 }
 0x331   : > { %v745_v2 = vmax.f32 %v741_v62, 0.0  ;;  %v737_v6 = vadd.f32 %v736_v1, %v649_v63  ;;  %v738_v8 = vpop.f32.mrb[5].mxu0 }
 0x332   : > { %v746_v9 = vmax.f32 %v742_v0, 0.0  ;;  %v739_v10 = vadd.f32 %v738_v8, %v649_v63 }
 0x333   : > { %749 = vst [vmem:[%s278_s13] sm:$0xff] %v745_v2  ;;  %v743_v11 = vadd.f32 %v737_v6, %v983_v7 }
 0x334   : > { %750 = vst [vmem:[%s278_s13 + $0x8] sm:$0xff] %v746_v9  ;;  %v744_v5 = vadd.f32 %v739_v10, %v977_v4 }
 0x335   : > { %v747_v12 = vmax.f32 %v743_v11, 0.0 }
 0x336   : > { %v748_v13 = vmax.f32 %v744_v5, 0.0 }
 0x337   : > { %751 = vst [vmem:[%s278_s13 + $0x10] sm:$0xff] %v747_v12 }
 0x338   : > { %752 = vst [vmem:[%s278_s13 + $0x18] sm:$0xff] %v748_v13 }
 0x339 PF: > { %s17_s24 = sadd.s32 1, %s902_s24  }
 0x33a   : > { %p14_p4 = scmp.ge.s32.totalorder %s17_s24, 4  }
 0x33c   :  { %16 = sbr.rel (!%p14_p4) target bundleno = 1 (0x1), region = 78 }

</bundles_post_ra>
